<compile_context>
chip_gen: v6e
topology: v6e:2x2x1
jax: 0.10.0
libtpu: 0.0.40
codegen_flags: <defaults>
</compile_context>

<pallas_src>
import functools
import math

import jax
import jax.numpy as jnp
from jax.experimental import pallas as pl
from jax.experimental.pallas import tpu as pltpu


def _poi2d_kernel(*refs, scale, num_dims):
    # refs = (x0_ref, ..., x_{D-1}_ref, o_ref); each x_ref and o_ref is a dense
    # (tm, tn) tile.  Pure VPU/EUP elementwise work, lane- and sublane-dense.
    x_refs = refs[:num_dims]
    o_ref = refs[num_dims]
    two_pi = 2.0 * jnp.pi
    prod = jnp.sin(two_pi * x_refs[0][...])
    for d in range(1, num_dims):                    # D is tiny (2); unrolled
        prod = prod * jnp.sin(two_pi * x_refs[d][...])
    o_ref[...] = scale * prod


def poi2d_homogen(x, *, tm=256, tn=512):
    """x: (N, D) float array of quadrature points. Returns (N,) array matching
    Poi2d_homogen.forward: -N * 4*pi^2 * prod(sin(2*pi*x), axis=1)."""
    N, D = x.shape

    # Dense 2-D slab layout: lane width tn (multiple of 128), row-block tm
    # (multiple of 8), shrunk for small N so padding stays negligible.
    tn_eff = min(tn, pl.cdiv(N, 128) * 128)
    rows = pl.cdiv(N, tn_eff)
    tm_eff = min(tm, pl.cdiv(rows, 8) * 8)
    rows_pad = pl.cdiv(rows, tm_eff) * tm_eff
    n_pad = rows_pad * tn_eff

    cols = []
    for d in range(D):
        col = x[:, d]                                        # layout plumbing in XLA
        if n_pad != N:
            col = jnp.pad(col, (0, n_pad - N))               # pad values sliced off
        cols.append(col.reshape(rows_pad, tn_eff))

    scale = float(-N * 4.0 * math.pi ** 2)                   # static at trace time

    out2d = pl.pallas_call(
        functools.partial(_poi2d_kernel, scale=scale, num_dims=D),
        out_shape=jax.ShapeDtypeStruct((rows_pad, tn_eff), x.dtype),
        grid_spec=pltpu.PrefetchScalarGridSpec(
            num_scalar_prefetch=0,
            grid=(rows_pad // tm_eff,),
            in_specs=[pl.BlockSpec((tm_eff, tn_eff), lambda i: (i, 0))] * D,
            out_specs=pl.BlockSpec((tm_eff, tn_eff), lambda i: (i, 0)),
        ),
        compiler_params=pltpu.CompilerParams(
            dimension_semantics=("parallel",),
        ),
    )(*cols)

    return out2d.reshape(n_pad)[:N]


if __name__ == "__main__":
    key = jax.random.PRNGKey(0)

    # Small shapes consistent with the module: N quadrature points in 2 dims.
    N, D = 16, 2
    x = jax.random.uniform(key, (N, D), dtype=jnp.float32)

    out = poi2d_homogen(x)
    out = jax.block_until_ready(out)

    # Reference check (plain JAX, same math as the PyTorch forward).
    ref = -float(N) * (4.0 * math.pi ** 2) * jnp.prod(
        jnp.sin(2.0 * jnp.pi * x), axis=1
    )
    assert out.shape == (N,), f"bad output shape {out.shape}"
    assert jnp.allclose(out, ref, atol=1e-3, rtol=1e-5), "output mismatch vs reference"

    print("KERNEL_OK")
</pallas_src>

<mosaic_0001>
module attributes {stable_mosaic.version = 11 : i64} {
  func.func @_poi2d_kernel(%arg0: i32, %arg1: memref<8x128xf32, #tpu.memory_space<vmem>>, %arg2: memref<8x128xf32, #tpu.memory_space<vmem>>, %arg3: memref<8x128xf32, #tpu.memory_space<vmem>>) attributes {dimension_semantics = [#tpu.dimension_semantics<parallel>], iteration_bounds = array<i64: 1>, scalar_prefetch = 0 : i64, scratch_operands = 0 : i64, tpu.core_type = #tpu.core_type<tc>, window_params = [{transform_indices = @transform_0, window_bounds = array<i64: 8, 128>}, {transform_indices = @transform_1, window_bounds = array<i64: 8, 128>}, {transform_indices = @transform_2, window_bounds = array<i64: 8, 128>}]} {
    %c0 = arith.constant 0 : index
    %c0_0 = arith.constant 0 : index
    %0 = vector.load %arg1[%c0, %c0_0] : memref<8x128xf32, #tpu.memory_space<vmem>>, vector<8x128xf32>
    %cst = arith.constant 6.28318548 : f32
    %1 = vector.broadcast %cst : f32 to vector<8x128xf32>
    %2 = arith.mulf %1, %0 : vector<8x128xf32>
    %3 = math.sin %2 : vector<8x128xf32>
    %c0_1 = arith.constant 0 : index
    %c0_2 = arith.constant 0 : index
    %4 = vector.load %arg2[%c0_1, %c0_2] : memref<8x128xf32, #tpu.memory_space<vmem>>, vector<8x128xf32>
    %cst_3 = arith.constant 6.28318548 : f32
    %5 = vector.broadcast %cst_3 : f32 to vector<8x128xf32>
    %6 = arith.mulf %5, %4 : vector<8x128xf32>
    %7 = math.sin %6 : vector<8x128xf32>
    %8 = arith.mulf %3, %7 : vector<8x128xf32>
    %cst_4 = arith.constant -631.654663 : f32
    %9 = vector.broadcast %cst_4 : f32 to vector<8x128xf32>
    %10 = arith.mulf %9, %8 : vector<8x128xf32>
    %c0_5 = arith.constant 0 : index
    %c0_6 = arith.constant 0 : index
    %11 = vector.load %arg3[%c0_5, %c0_6] : memref<8x128xf32, #tpu.memory_space<vmem>>, vector<8x128xf32>
    tpu.vector_store %arg3[%c0_5, %c0_6], %10 {strides = array<i32>} : memref<8x128xf32, #tpu.memory_space<vmem>>, vector<8x128xf32>,
    return
  }
  func.func @transform_0(%arg0: i32) -> (i32, i32) {
    %c0_i32 = arith.constant 0 : i32
    %c0_i32_0 = arith.constant 0 : i32
    return %arg0, %c0_i32 : i32, i32
  }
  func.func @transform_1(%arg0: i32) -> (i32, i32) {
    %c0_i32 = arith.constant 0 : i32
    %c0_i32_0 = arith.constant 0 : i32
    return %arg0, %c0_i32 : i32, i32
  }
  func.func @transform_2(%arg0: i32) -> (i32, i32) {
    %c0_i32 = arith.constant 0 : i32
    %c0_i32_0 = arith.constant 0 : i32
    return %arg0, %c0_i32 : i32, i32
  }
}

</mosaic_0001>

<bundles_post_ra>
// kernel: tpu_custom_call.1
= control target key start
LH: loop header
LB: loop body
LE: loop exit
PB: predicated region body
PF: predicated region fallthrough
CT: control target
= control target key end

     0   :  { %7 = vsyncpa [#allocation3], 0  ;;  %s477_s0 = inlined_call_operand.hbm [shape: f32[8,128], index: 0, kind: input, shape index: {}]   ;;  %s478_s1 = inlined_call_operand.hbm [shape: f32[8,128], index: 1, kind: input, shape index: {}]   ;;  %s479_s2 = inlined_call_operand.hbm [shape: f32[8,128], index: 2, kind: output, shape index: {}]  }
   0x1   :  { %8 = vsyncpa [#allocation6], 0 }
   0x2   :  { %9 = vsyncpa [#allocation4], 0  ;;  %s366_s9 = smov [#allocation2]   ;;  %s367_s11 = smov [#allocation5]  }
   0x3   :  { %s16_s10 = sshll.u32 %s366_s9, 4  ;;  %s26_s12 = sshll.u32 %s367_s11, 4  ;;  %s17_s10 = int_to_ptr.vmem [resolvable:$true] %s16_s10  ;;  %s27_s12 = int_to_ptr.vmem [resolvable:$true] %s26_s12 }
   0x4   :  { %s308_s13 = scalar_lea.vmem %s17_s10, 128  ;;  %p313_p1 = scmp.lt.s32.totalorder %s17_s10, %s17_s10 }
   0x5   :  { %p309_p0 = scmp.ne.s32.totalorder %s17_s10, %s308_s13  ;;  %p314_p2 = scmp.lt.s32.totalorder %s308_s13, %s308_s13 }
   0x7   :  { %p315_p3 = por %p314_p2, %p313_p1 }
   0x9   :  { %p316_p4 = pnand %p315_p3, %p309_p0 }
   0xb   :  { %319 = shalt.err (!%p316_p4)
}
   0xc   :  { %19 = dma.hbm_to_vmem [thread:$0]  %s477_s0, 128, %s17_s10, [#allocation3]  }
   0xd   :  { %s328_s16 = scalar_lea.vmem %s27_s12, 128  ;;  %p333_p6 = scmp.lt.s32.totalorder %s27_s12, %s27_s12 }
   0xe   :  { %p329_p5 = scmp.ne.s32.totalorder %s27_s12, %s328_s16  ;;  %p334_p7 = scmp.lt.s32.totalorder %s328_s16, %s328_s16 }
  0x10   :  { %p335_p8 = por %p334_p7, %p333_p6 }
  0x12   :  { %p336_p9 = pnand %p335_p8, %p329_p5 }
  0x14   :  { %339 = shalt.err (!%p336_p9)
}
  0x15   :  { %29 = dma.hbm_to_vmem [thread:$0]  %s478_s1, 128, %s27_s12, [#allocation6]  }
  0x16   :  { %360 = dma.done.wait [#allocation3], 128  }
  0x17   :  { %361 = vsyncadd [#allocation3], 4294967168 }
  0x18   :  { %362 = dma.done.wait [#allocation6], 128  }
  0x19   :  { %363 = vsyncadd [#allocation6], 4294967168  ;;  %v36_v0 = vld [vmem:[#allocation2] sm:$0xff]  ;;  %v142_v1 = vld [vmem:[#allocation5] sm:$0xff]  ;;  %v368_v26 = vmov 683565275  }
  0x1a   :  { %v396_v2 = vmul.f32 6.2831855, %v36_v0  ;;  %v398_v3 = vmul.f32 6.2831855, %v142_v1  ;;  %v369_v28 = vmov 2475754826  }
  0x1b   :  { %v370_v30 = vmov 2131351028   ;;  %v371_v32 = vmov 2102212464   ;;  %v372_v34 = vmov 920167782  }
  0x1c   :  { %v38_v4 = vand.u32 2147483647, %v396_v2  ;;  %v41_v5 = vand.u32 2139095040, %v396_v2  ;;  %v144_v6 = vand.u32 2147483647, %v398_v3  ;;  %v147_v7 = vand.u32 2139095040, %v398_v3 }
  0x1d   :  { %v373_v42 = vmov 1326507024   ;;  %vm40_vm14 = vcmp.lt.s32.totalorder %v396_v2, 0  ;;  %s374_s0 = smov [#allocation7]  }
  0x1e   :  { %v42_v8 = vshrl.u32 %v41_v5, 23  ;;  %v45_v9 = vand.u32 8388607, %v38_v4  ;;  %v148_v10 = vshrl.u32 %v147_v7, 23  ;;  %v151_v11 = vand.u32 8388607, %v144_v6 }
  0x1f   :  { %vm459_vm15 = vcmp.le.f32.partialorder %v38_v4, 0.7853982  ;;  %s257_s1 = sshll.u32 %s374_s0, 4  ;;  %s258_s1 = int_to_ptr.vmem [resolvable:$true] %s257_s1 }
  0x20   :  { %v267_v12 = vadd.s32 4294967169, %v42_v8  ;;  %v271_v13 = vadd.s32 4294967169, %v148_v10  ;;  %v46_v15 = vor.u32 8388608, %v45_v9  ;;  %v152_v16 = vor.u32 8388608, %v151_v11  ;;  %s340_s19 = scalar_lea.vmem %s258_s1, 128  ;;  %p345_p11 = scmp.lt.s32.totalorder %s258_s1, %s258_s1 }
  0x21   :  { %p341_p10 = scmp.ne.s32.totalorder %s258_s1, %s340_s19  ;;  %p346_p12 = scmp.lt.s32.totalorder %s340_s19, %s340_s19 }
  0x22   :  { %v48_v14 = vadd.s32 1, %v267_v12  ;;  %v154_v17 = vadd.s32 1, %v271_v13  ;;  %v408_v22 = vshll.u32 %v46_v15, 8  ;;  %v410_v24 = vshll.u32 %v152_v16, 8 }
  0x23   :  { %p347_p13 = por %p346_p12, %p345_p11 }
  0x24   :  { %vm49_vm0 = vcmp.gt.s32.totalorder %v48_v14, 0  ;;  %vm155_vm1 = vcmp.gt.s32.totalorder %v154_v17, 0 }
  0x25   :  { %v50_v18 = vsel %vm49_vm0, %v48_v14, 0  ;;  %v156_v21 = vsel %vm155_vm1, %v154_v17, 0  ;;  %vm146_vm0 = vcmp.lt.s32.totalorder %v398_v3, 0  ;;  %vm145_vm1 = vcmp.le.f32.partialorder %v144_v6, 0.7853982  ;;  %p348_p0 = pnand %p347_p13, %p341_p10 }
  0x26   :  { %v51_v19 = vshrl.u32 %v50_v18, 5  ;;  %v52_v20 = vand.u32 31, %v50_v18  ;;  %v158_v23 = vand.u32 31, %v156_v21  ;;  %v412_v36 = vshrl.u32 %v156_v21, 5 }
  0x28   :  { %v53_v25 = vsub.s32 32, %v52_v20  ;;  %v55_v27 = vshll.u32 %v368_v26, %v52_v20  ;;  %v58_v29 = vshll.u32 %v369_v28, %v52_v20  ;;  %v61_v31 = vshll.u32 %v370_v30, %v52_v20 }
  0x29   :  { %v64_v33 = vshll.u32 %v371_v32, %v52_v20  ;;  %v67_v35 = vshll.u32 %v372_v34, %v52_v20  ;;  %vm70_vm2 = vcmp.lt.s32.totalorder %v51_v19, 1  ;;  %vm71_vm3 = vcmp.lt.s32.totalorder %v51_v19, 2 }
  0x2a   :  { %v54_v37 = vshrl.u32 %v368_v26, %v53_v25  ;;  %v56_v38 = vshrl.u32 %v369_v28, %v53_v25  ;;  %v59_v39 = vshrl.u32 %v370_v30, %v53_v25  ;;  %v62_v40 = vshrl.u32 %v371_v32, %v53_v25 }
  0x2b   :  { %v65_v41 = vshrl.u32 %v372_v34, %v53_v25  ;;  %v68_v43 = vshrl.u32 %v373_v42, %v53_v25  ;;  %vm73_vm4 = vcmp.lt.s32.totalorder %v51_v19, 4  ;;  %v159_v47 = vsub.s32 32, %v158_v23 }
  0x2c   :  { %v57_v44 = vor.u32 %v56_v38, %v55_v27  ;;  %v60_v45 = vor.u32 %v59_v39, %v58_v29  ;;  %v63_v46 = vor.u32 %v62_v40, %v61_v31  ;;  %vm72_vm5 = vcmp.lt.s32.totalorder %v51_v19, 3 }
  0x2d   :  { %v66_v48 = vor.u32 %v65_v41, %v64_v33  ;;  %v69_v49 = vor.u32 %v68_v43, %v67_v35  ;;  %v161_v50 = vshll.u32 %v368_v26, %v158_v23  ;;  %v164_v58 = vshll.u32 %v369_v28, %v158_v23 }
  0x2e   :  { %v74_v51 = vsel %vm70_vm2, %v54_v37, %v57_v44  ;;  %v75_v52 = vsel %vm73_vm4, %v63_v46, 2102212464  ;;  %v78_v53 = vsel %vm70_vm2, %v57_v44, %v60_v45  ;;  %v82_v54 = vsel %vm70_vm2, %v60_v45, %v63_v46 }
  0x2f   :  { %v76_v55 = vsel %vm72_vm5, %v60_v45, %v75_v52  ;;  %v79_v56 = vsel %vm73_vm4, %v66_v48, 920167782  ;;  %v83_v57 = vsel %vm73_vm4, %v69_v49, 1326507024  ;;  %v160_v61 = vshrl.u32 %v368_v26, %v159_v47 }
  0x30   :  { %v80_v59 = vsel %vm72_vm5, %v63_v46, %v79_v56  ;;  %v84_v60 = vsel %vm72_vm5, %v66_v48, %v83_v57  ;;  %v162_v62 = vshrl.u32 %v369_v28, %v159_v47  ;;  %v77_v63 = vsel %vm71_vm3, %v74_v51, %v76_v55 }
  0x31   :  { %v81_v0 = vsel %vm71_vm3, %v78_v53, %v80_v59  ;;  %v85_v1 = vsel %vm71_vm3, %v82_v54, %v84_v60  ;;  %v165_v5 = vshrl.u32 %v370_v30, %v159_v47  ;;  %v167_v13 = vshll.u32 %v370_v30, %v158_v23 }
  0x32   :  { %v421_v7 = vmul.u32.u64.low %v408_v22, %v85_v1  ;;  %v422_v8 = vmul.u32.u64.high %v408_v22, %v85_v1, %v421_v7  ;;  %v425_v9 = vmul.u32.u64.low %v408_v22, %v81_v0  ;;  %v426_v10 = vmul.u32.u64.high %v408_v22, %v81_v0, %v425_v9 }
  0x33   :  { %v163_v11 = vor.u32 %v162_v62, %v161_v50  ;;  %v166_v12 = vor.u32 %v165_v5, %v164_v58  ;;  %v168_v14 = vshrl.u32 %v371_v32, %v159_v47  ;;  %v170_v15 = vshll.u32 %v371_v32, %v158_v23 }
  0x34   :  { %v171_v16 = vshrl.u32 %v372_v34, %v159_v47  ;;  %v173_v17 = vshll.u32 %v372_v34, %v158_v23  ;;  %v174_v18 = vshrl.u32 %v373_v42, %v159_v47  ;;  %v93_v19 = vmul.u32 %v408_v22, %v77_v63 }
  0x35   :  { %v169_v20 = vor.u32 %v168_v14, %v167_v13  ;;  %vm176_vm6 = vcmp.lt.s32.totalorder %v412_v36, 1  ;;  %vm177_vm7 = vcmp.lt.s32.totalorder %v412_v36, 2  ;;  %vm95_vm8 = vc.u32 %v422_v8, %v425_v9 }
  0x36   :  { %v96_v21 = vadd.s32 1, %v426_v10  ;;  %v172_v25 = vor.u32 %v171_v16, %v170_v15  ;;  %vm178_vm9 = vcmp.lt.s32.totalorder %v412_v36, 3  ;;  %v175_v26 = vor.u32 %v174_v18, %v173_v17 }
  0x37   :  { %vm179_vm10 = vcmp.lt.s32.totalorder %v412_v36, 4  ;;  %v180_v27 = vsel %vm176_vm6, %v160_v61, %v163_v11  ;;  %v184_v23 = vsel %vm176_vm6, %v163_v11, %v166_v12  ;;  %v188_v30 = vsel %vm176_vm6, %v166_v12, %v169_v20 }
  0x38   :  { %v97_v28 = vsel %vm95_vm8, %v96_v21, %v426_v10  ;;  %v181_v22 = vsel %vm179_vm10, %v169_v20, 2102212464  ;;  %v185_v29 = vsel %vm179_vm10, %v172_v25, 920167782  ;;  %v189_v34 = vsel %vm179_vm10, %v175_v26, 1326507024 }
  0x39   :  { %v98_v31 = vadd.s32 %v97_v28, %v93_v19  ;;  %v182_v32 = vsel %vm178_vm9, %v166_v12, %v181_v22  ;;  %v186_v33 = vsel %vm178_vm9, %v169_v20, %v185_v29  ;;  %v190_v38 = vsel %vm178_vm9, %v172_v25, %v189_v34 }
  0x3a   :  { %v183_v35 = vsel %vm177_vm7, %v180_v27, %v182_v32  ;;  %v187_v37 = vsel %vm177_vm7, %v184_v23, %v186_v33  ;;  %v191_v40 = vsel %vm177_vm7, %v188_v30, %v190_v38  ;;  %v94_v59 = vadd.s32 %v425_v9, %v422_v8 }
  0x3b   :  { %v99_v39 = vadd.s32 536870912, %v98_v31  ;;  %v443_v41 = vmul.u32.u64.low %v410_v24, %v187_v37  ;;  %v444_v42 = vmul.u32.u64.high %v410_v24, %v187_v37, %v443_v41  ;;  %v199_v46 = vmul.u32 %v410_v24, %v183_v35 }
  0x3c   :  { %v447_v43 = vmul.u32.u64.low %v410_v24, %v191_v40  ;;  %v448_v44 = vmul.u32.u64.high %v410_v24, %v191_v40, %v447_v43  ;;  %vm130_vm6 = vweird.f32 %v396_v2  ;;  %vm236_vm9 = vweird.f32 %v398_v3 }
  0x3d   :  { %v100_v45 = vshrl.u32 %v99_v39, 30  ;;  %v202_v48 = vadd.s32 1, %v444_v42 }
  0x3e   :  { %vm201_vm11 = vc.u32 %v448_v44, %v443_v41  ;;  %v200_v15 = vadd.s32 %v443_v41, %v448_v44 }
  0x3f   :  { %v101_v47 = vshll.u32 %v100_v45, 30  ;;  %v203_v36 = vsel %vm201_vm11, %v202_v48, %v444_v42  ;;  %v124_v22 = vsub.s32 4, %v100_v45 }
  0x40   :  { %v204_v50 = vadd.s32 %v203_v36, %v199_v46 }
  0x41   :  { %v102_v49 = vsub.s32 %v98_v31, %v101_v47  ;;  %v125_v33 = vsel %vm40_vm14, %v124_v22, %v100_v45 }
  0x42   :  { %v205_v52 = vadd.s32 536870912, %v204_v50  ;;  %v127_v37 = vsel %vm459_vm15, 0, %v125_v33 }
  0x43   :  { %v104_v51 = vsub.s32 0, %v102_v49  ;;  %v131_v41 = vadd.s32 3, %v127_v37 }
  0x44   :  { %v206_v54 = vshrl.u32 %v205_v52, 30 }
  0x45   :  { %v268_v53 = vmin.u32 %v104_v51, %v102_v49  ;;  %v132_v44 = vand.u32 3, %v131_v41 }
  0x46   :  { %v207_v56 = vshll.u32 %v206_v54, 30  ;;  %v230_v4 = vsub.s32 4, %v206_v54 }
  0x47   :  { %v106_v55 = vclz %v268_v53  ;;  %vm134_vm2 = vcmp.eq.s32.totalorder %v132_v44, 0  ;;  %vm137_vm3 = vcmp.eq.s32.totalorder %v132_v44, 2  ;;  %vm133_vm4 = vcmp.lt.s32.totalorder %v132_v44, 2 }
  0x48   :  { %v208_v58 = vsub.s32 %v204_v50, %v207_v56  ;;  %v231_v39 = vsel %vm146_vm0, %v230_v4, %v206_v54 }
  0x49   :  { %v269_v57 = vadd.s32 4294967294, %v106_v55  ;;  %v233_v42 = vsel %vm145_vm1, 0, %v231_v39 }
  0x4a   :  { %v210_v60 = vsub.s32 0, %v208_v58  ;;  %v237_v46 = vadd.s32 3, %v233_v42 }
  0x4b   :  { %vm270_vm12 = vcmp.lt.s32.totalorder %v269_v57, 0 }
  0x4c   :  { %v109_v24 = vsel %vm270_vm12, 0, %v269_v57  ;;  %v272_v0 = vmin.u32 %v210_v60, %v208_v58  ;;  %v238_v6 = vand.u32 3, %v237_v46 }
  0x4d   :  { %v110_v61 = vsub.s32 32, %v109_v24  ;;  %v111_v62 = vshll.u32 %v102_v49, %v109_v24  ;;  %v114_v63 = vsub.s32 4294967266, %v109_v24 }
  0x4e   :  { %v212_v7 = vclz %v272_v0  ;;  %vm243_vm5 = vcmp.eq.s32.totalorder %v238_v6, 2  ;;  %vm240_vm7 = vcmp.eq.s32.totalorder %v238_v6, 0  ;;  %vm239_vm8 = vcmp.lt.s32.totalorder %v238_v6, 2 }
  0x4f   :  { %v112_v1 = vshrl.u32 %v94_v59, %v110_v61  ;;  %v115_v5 = vadd.s32 127, %v114_v63 }
  0x50   :  { %v273_v12 = vadd.s32 4294967294, %v212_v7 }
  0x51   :  { %v113_v10 = vor.u32 %v112_v1, %v111_v62  ;;  %v116_v11 = vshll.u32 %v115_v5, 23 }
  0x52   :  { %vm274_vm13 = vcmp.lt.s32.totalorder %v273_v12, 0 }
  0x53   :  { %v117_v13 = vor.u32 4788187, %v116_v11  ;;  %v120_v14 = vcvt.s32.f32 %v113_v10  ;;  %v215_v8 = vsel %vm274_vm13, 0, %v273_v12 }
  0x54   :  { %v216_v9 = vsub.s32 32, %v215_v8  ;;  %v217_v17 = vshll.u32 %v208_v58, %v215_v8  ;;  %v220_v18 = vsub.s32 4294967266, %v215_v8 }
  0x55   :  { %v118_v16 = vand.u32 2147483647, %v117_v13 }
  0x56   :  { %v218_v20 = vshrl.u32 %v200_v15, %v216_v9  ;;  %v221_v21 = vadd.s32 127, %v220_v18 }
  0x57   :  { %v121_v19 = vmul.f32 %v120_v14, %v118_v16 }
  0x58   :  { %v219_v27 = vor.u32 %v218_v20, %v217_v17  ;;  %v222_v23 = vshll.u32 %v221_v21, 23 }
  0x59   :  { %v122_v26 = vxor.u32 2147483648, %v121_v19 }
  0x5a   :  { %v223_v30 = vor.u32 4788187, %v222_v23  ;;  %v226_v31 = vcvt.s32.f32 %v219_v27 }
  0x5b   :  { %v123_v28 = vsel %vm40_vm14, %v122_v26, %v121_v19 }
  0x5c   :  { %v126_v29 = vsel %vm459_vm15, %v396_v2, %v123_v28  ;;  %v224_v32 = vand.u32 2147483647, %v223_v30 }
  0x5d   :  { %292 = vcosq.f32 %v126_v29 }
  0x5e   :  { %294 = vsinq.f32 %v126_v29  ;;  %v227_v34 = vmul.f32 %v226_v31, %v224_v32 }
  0x60   :  { %v228_v35 = vxor.u32 2147483648, %v227_v34 }
  0x62   :  { %v229_v38 = vsel %vm146_vm0, %v228_v35, %v227_v34 }
  0x63   :  { %v232_v40 = vsel %vm145_vm1, %v398_v3, %v229_v38 }
  0x64   :  { %296 = vcosq.f32 %v232_v40 }
  0x65   :  { %298 = vsinq.f32 %v232_v40 }
  0x6a   :  { %v293_v43 = vpop.eup %292 }
  0x6b   :  { %v295_v45 = vpop.eup %294  ;;  %v138_v48 = vxor.u32 2147483648, %v293_v43 }
  0x6c   :  { %v135_v47 = vxor.u32 2147483648, %v295_v45 }
  0x6d   :  { %v139_v36 = vsel %vm137_vm3, %v138_v48, %v295_v45 }
  0x6e   :  { %v136_v49 = vsel %vm134_vm2, %v293_v43, %v135_v47 }
  0x6f   :  { %v140_v52 = vsel %vm133_vm4, %v136_v49, %v139_v36 }
  0x70   :  { %v141_v56 = vsel %vm130_vm6, nan, %v140_v52 }
  0x71   :  { %v297_v50 = vpop.eup %296 }
  0x72   :  { %v299_v51 = vpop.eup %298  ;;  %v244_v53 = vxor.u32 2147483648, %v297_v50 }
  0x73   :  { %v241_v54 = vxor.u32 2147483648, %v299_v51 }
  0x74   :  { %v245_v55 = vsel %vm243_vm5, %v244_v53, %v299_v51 }
  0x75   :  { %v242_v57 = vsel %vm240_vm7, %v297_v50, %v241_v54 }
  0x76   :  { %v246_v58 = vsel %vm239_vm8, %v242_v57, %v245_v55 }
  0x77   :  { %v247_v59 = vsel %vm236_vm9, nan, %v246_v58 }
  0x78   :  { %v248_v24 = vmul.f32 %v247_v59, %v141_v56 }
  0x7a   :  { %v249_v60 = vmul.f32 -631.65466, %v248_v24 }
  0x7c   :  { %250 = vst [vmem:[#allocation7] sm:$0xff] %v249_v60 }
  0x7d   :  { %351 = shalt.err (!%p348_p0)
}
  0x7e   :  { %260 = dma.vmem_to_hbm [thread:$0]  %s258_s1, 128, %s479_s2, [#allocation4]  }
  0x7f   :  { %364 = dma.done.wait [#allocation4], 128  }
  0x80   :  { %365 = vsyncadd [#allocation4], 4294967168 }
  0x81   :  { %264 = vsyncpa [#allocation3], 1 }
  0x82   :  { %265 = vsyncpa [#allocation6], 1 }
  0x83   :  { %266 = vsyncpa [#allocation4], 1 }

</bundles_post_ra>
